<compile_context>
chip_gen: v7x
topology: tpu7x:2x2x1
jax: 0.10.0
libtpu: 0.0.40
codegen_flags: <defaults>
</compile_context>

<pallas_src>
import jax
import jax.numpy as jnp
from jax.experimental import pallas as pl
from jax.experimental.pallas import tpu as pltpu

INPUT_DIM = 128       # fixed by the module's reshape(-1, 256) / (-1, 2, 128)
ENCODING_DIM = 64     # hyperparameter (must be even); true width of `encoded`
ENC_PAD = 128         # lane-dense padded width for the 64-wide encoding output
MAX_TILE_B = 1024     # batch-tile cap: ~4-5 MiB live VMEM, safe on v5e/v6e/v7x


# ----------------------------------------------------------------------------
# Parameter construction (deterministic, PyTorch-nn.Linear-style init)
# ----------------------------------------------------------------------------
def _linear_init(key, out_f, in_f):
    """PyTorch nn.Linear default init: U(-1/sqrt(in), 1/sqrt(in))."""
    kw, kb = jax.random.split(key)
    bound = 1.0 / jnp.sqrt(jnp.float32(in_f))
    w = jax.random.uniform(kw, (out_f, in_f), jnp.float32, -bound, bound)
    b = jax.random.uniform(kb, (out_f,), jnp.float32, -bound, bound)
    return w, b


def _complex_linear_params(key, in_f, out_f):
    """Equivalent single dense (W, b) for one ComplexLinear layer.

    Returns W (2*in_f, 2*out_f) and b (1, 2*out_f) with
        cat(out_r, out_i) = x @ W + b   for x = cat(x_r, x_i).
    """
    kr, ki = jax.random.split(key)
    w_r, b_r = _linear_init(kr, out_f, in_f)
    w_i, b_i = _linear_init(ki, out_f, in_f)
    top = jnp.concatenate([w_r.T, w_i.T], axis=1)          # (in_f, 2*out_f)
    bot = jnp.concatenate([-w_i.T, w_r.T], axis=1)         # (in_f, 2*out_f)
    w = jnp.concatenate([top, bot], axis=0)                # (2*in_f, 2*out_f)
    b = jnp.concatenate([b_r - b_i, b_r + b_i])[None, :]   # (1, 2*out_f)
    return w, b, (w_r, b_r, w_i, b_i)


def make_params(key, input_dim=INPUT_DIM, encoding_dim=ENCODING_DIM):
    keys = jax.random.split(key, 4)
    l1 = _complex_linear_params(keys[0], input_dim, encoding_dim)        # 256->128
    l2 = _complex_linear_params(keys[1], encoding_dim, encoding_dim // 2)  # 128->64
    l3 = _complex_linear_params(keys[2], encoding_dim // 2, encoding_dim)  # 64->128
    l4 = _complex_linear_params(keys[3], encoding_dim, input_dim)        # 128->256

    w1, b1 = l1[0], l1[1]
    w2, b2 = l2[0], l2[1]
    w3, b3 = l3[0], l3[1]
    w4, b4 = l4[0], l4[1]

    # Exact fusion of layers 2 & 3 (no nonlinearity in between):
    #   h3_pre = (h1 @ w2 + b2) @ w3 + b3 = h1 @ (w2 @ w3) + (b2 @ w3 + b3)
    w23 = w2 @ w3                                      # (128, 128)
    b23 = b2 @ w3 + b3                                 # (1, 128)

    # Lane-dense padding of the 64-wide encoding output (extra lanes are 0).
    enc_w = 2 * (encoding_dim // 2)
    w2p = jnp.pad(w2, ((0, 0), (0, ENC_PAD - enc_w)))  # (128, 128)
    b2p = jnp.pad(b2, ((0, 0), (0, ENC_PAD - enc_w)))  # (1, 128)

    bf16 = jnp.bfloat16
    combined = (w1.astype(bf16), b1,        # weights in bf16 (MXU), biases f32
                w2p.astype(bf16), b2p,
                w23.astype(bf16), b23,
                w4.astype(bf16), b4)
    raw = (l1[2], l2[2], l3[2], l4[2])
    return combined, raw


# ----------------------------------------------------------------------------
# Pallas kernel: one batch tile of the whole 4-layer MLP
# ----------------------------------------------------------------------------
def _autoencoder_kernel(x_ref, w1_ref, b1_ref, w2_ref, b2_ref,
                        w23_ref, b23_ref, w4_ref, b4_ref,
                        enc_ref, dec_ref):
    x = x_ref[...]                                                    # (TB, 256) bf16
    h1 = jnp.dot(x, w1_ref[...], preferred_element_type=jnp.float32) + b1_ref[...]
    h1 = jnp.maximum(h1, 0.0).astype(jnp.bfloat16)                    # ReLU (f32) -> bf16
    # Two independent matmuls off h1 (enc output + fused layer-2/3 path).
    enc = jnp.dot(h1, w2_ref[...], preferred_element_type=jnp.float32) + b2_ref[...]
    h3 = jnp.dot(h1, w23_ref[...], preferred_element_type=jnp.float32) + b23_ref[...]
    h3 = jnp.maximum(h3, 0.0).astype(jnp.bfloat16)                    # ReLU (f32) -> bf16
    dec = jnp.dot(h3, w4_ref[...], preferred_element_type=jnp.float32) + b4_ref[...]
    enc_ref[...] = enc                                                # (TB, 128) padded
    dec_ref[...] = dec                                                # (TB, 256)


def complex_autoencoder_forward(x, combined_params, *, max_tile_b=MAX_TILE_B):
    """x: any shape with total size divisible by 256. Returns (encoded, decoded)."""
    w1, b1, w2, b2, w23, b23, w4, b4 = combined_params
    in_w = w1.shape[0]          # 256
    enc_pad_w = w2.shape[1]     # 128 (lane-dense padded)
    dec_w = w4.shape[1]         # 256

    x2d = x.reshape(-1, in_w).astype(jnp.bfloat16)
    batch = x2d.shape[0]

    # Batch tile: multiple of 8 sublanes, capped; pad ragged tail with zeros.
    tile_b = min(max_tile_b, ((batch + 7) // 8) * 8)
    tile_b = max(8, ((tile_b + 7) // 8) * 8)
    padded = ((batch + tile_b - 1) // tile_b) * tile_b
    if padded != batch:
        x2d = jnp.pad(x2d, ((0, padded - batch), (0, 0)))
    grid = (padded // tile_b,)

    def row_spec(width):
        return pl.BlockSpec((tile_b, width), lambda i: (i, 0))

    def const_spec(a):                       # resident in VMEM across grid steps
        return pl.BlockSpec(a.shape, lambda i: (0, 0))

    per_row_flops = 2 * (w1.shape[0] * w1.shape[1] + w2.shape[0] * w2.shape[1]
                         + w23.shape[0] * w23.shape[1] + w4.shape[0] * w4.shape[1])
    weight_bytes = sum(int(a.size) * a.dtype.itemsize
                       for a in (w1, b1, w2, b2, w23, b23, w4, b4))
    cost = pl.CostEstimate(
        flops=int(per_row_flops) * int(padded),
        transcendentals=0,
        bytes_accessed=int(padded) * (in_w * 2 + enc_pad_w * 4 + dec_w * 4)
                       + int(weight_bytes),
    )

    enc_shape = jax.ShapeDtypeStruct((padded, enc_pad_w), jnp.float32)
    dec_shape = jax.ShapeDtypeStruct((padded, dec_w), jnp.float32)

    enc_p, dec_p = pl.pallas_call(
        _autoencoder_kernel,
        out_shape=(enc_shape, dec_shape),
        grid=grid,
        in_specs=[row_spec(in_w),
                  const_spec(w1), const_spec(b1),
                  const_spec(w2), const_spec(b2),
                  const_spec(w23), const_spec(b23),
                  const_spec(w4), const_spec(b4)],
        out_specs=(row_spec(enc_pad_w), row_spec(dec_w)),
        compiler_params=pltpu.CompilerParams(
            dimension_semantics=("parallel",)),      # shard batch tiles across TCs (v7x)
        cost_estimate=cost,
    )(x2d, w1, b1, w2, b2, w23, b23, w4, b4)

    encoded = enc_p[:batch, :ENCODING_DIM]           # strip lane padding
    decoded = dec_p[:batch].reshape(-1, 2, INPUT_DIM)
    return encoded, decoded


# ----------------------------------------------------------------------------
# Pure-JAX reference (direct transcription of the PyTorch forward, f32)
# ----------------------------------------------------------------------------
def _ref_complex_linear(x, w_r, b_r, w_i, b_i):
    a = x.shape[1] // 2
    x_r, x_i = x[:, :a], x[:, a:]
    out_r = (x_r @ w_r.T + b_r) - (x_i @ w_i.T + b_i)
    out_i = (x_i @ w_r.T + b_r) + (x_r @ w_i.T + b_i)
    return jnp.concatenate([out_r, out_i], axis=-1)


def reference_forward(x, raw_params):
    l1, l2, l3, l4 = raw_params
    x = x.reshape(-1, 2 * INPUT_DIM).astype(jnp.float32)
    h = jnp.maximum(_ref_complex_linear(x, *l1), 0.0)
    encoded = _ref_complex_linear(h, *l2)
    h = jnp.maximum(_ref_complex_linear(encoded, *l3), 0.0)
    decoded = _ref_complex_linear(h, *l4).reshape(-1, 2, INPUT_DIM)
    return encoded, decoded


if __name__ == "__main__":
    key = jax.random.PRNGKey(0)
    k_params, k_x1, k_x2 = jax.random.split(key, 3)

    combined, raw = make_params(k_params)

    # Small deterministic input: 4 complex signals of 128 real + 128 imag.
    x = jax.random.normal(k_x1, (4, 2, 128), dtype=jnp.float32)
    enc, dec = complex_autoencoder_forward(x, combined)
    jax.block_until_ready((enc, dec))

    enc_ref, dec_ref = reference_forward(x, raw)
    assert enc.shape == (4, ENCODING_DIM)
    assert dec.shape == (4, 2, INPUT_DIM)
    # bf16 matmul inputs with f32 accumulation -> loosened tolerance vs f32 ref.
    assert jnp.allclose(enc, enc_ref, atol=5e-2, rtol=5e-2), \
        float(jnp.max(jnp.abs(enc - enc_ref)))
    assert jnp.allclose(dec, dec_ref, atol=5e-2, rtol=5e-2), \
        float(jnp.max(jnp.abs(dec - dec_ref)))

    # Exercise the batch grid + ragged-tail padding path (grid of 3 tiles).
    x_big = jax.random.normal(k_x2, (40, 2, 128), dtype=jnp.float32)
    enc_b, dec_b = complex_autoencoder_forward(x_big, combined, max_tile_b=16)
    jax.block_until_ready((enc_b, dec_b))
    enc_br, dec_br = reference_forward(x_big, raw)
    assert enc_b.shape == (40, ENCODING_DIM) and dec_b.shape == (40, 2, INPUT_DIM)
    assert jnp.allclose(enc_b, enc_br, atol=5e-2, rtol=5e-2)
    assert jnp.allclose(dec_b, dec_br, atol=5e-2, rtol=5e-2)

    print("KERNEL_OK")
</pallas_src>

<mosaic_0001>
module attributes {stable_mosaic.version = 11 : i64} {
  func.func @_autoencoder_kernel(%arg0: i32, %arg1: memref<8x256xbf16, #tpu.memory_space<vmem>>, %arg2: memref<256x128xbf16, #tpu.memory_space<vmem>>, %arg3: memref<1x128xf32, #tpu.memory_space<vmem>>, %arg4: memref<128x128xbf16, #tpu.memory_space<vmem>>, %arg5: memref<1x128xf32, #tpu.memory_space<vmem>>, %arg6: memref<128x128xbf16, #tpu.memory_space<vmem>>, %arg7: memref<1x128xf32, #tpu.memory_space<vmem>>, %arg8: memref<128x256xbf16, #tpu.memory_space<vmem>>, %arg9: memref<1x256xf32, #tpu.memory_space<vmem>>, %arg10: memref<8x128xf32, #tpu.memory_space<vmem>>, %arg11: memref<8x256xf32, #tpu.memory_space<vmem>>) attributes {dimension_semantics = [#tpu.dimension_semantics<parallel>], iteration_bounds = array<i64: 1>, scalar_prefetch = 0 : i64, scratch_operands = 0 : i64, tpu.core_type = #tpu.core_type<tc>, window_params = [{transform_indices = @transform_0, window_bounds = array<i64: 8, 256>}, {pipeline_mode = #tpu.pipeline_mode<synchronous>, transform_indices = @transform_1, window_bounds = array<i64: 256, 128>}, {pipeline_mode = #tpu.pipeline_mode<synchronous>, transform_indices = @transform_2, window_bounds = array<i64: 1, 128>}, {pipeline_mode = #tpu.pipeline_mode<synchronous>, transform_indices = @transform_3, window_bounds = array<i64: 128, 128>}, {pipeline_mode = #tpu.pipeline_mode<synchronous>, transform_indices = @transform_4, window_bounds = array<i64: 1, 128>}, {pipeline_mode = #tpu.pipeline_mode<synchronous>, transform_indices = @transform_5, window_bounds = array<i64: 128, 128>}, {pipeline_mode = #tpu.pipeline_mode<synchronous>, transform_indices = @transform_6, window_bounds = array<i64: 1, 128>}, {pipeline_mode = #tpu.pipeline_mode<synchronous>, transform_indices = @transform_7, window_bounds = array<i64: 128, 256>}, {pipeline_mode = #tpu.pipeline_mode<synchronous>, transform_indices = @transform_8, window_bounds = array<i64: 1, 256>}, {transform_indices = @transform_9, window_bounds = array<i64: 8, 128>}, {transform_indices = @transform_10, window_bounds = array<i64: 8, 256>}]} {
    %c0 = arith.constant 0 : index
    %c0_0 = arith.constant 0 : index
    %0 = vector.load %arg1[%c0, %c0_0] : memref<8x256xbf16, #tpu.memory_space<vmem>>, vector<8x256xbf16>
    %c0_1 = arith.constant 0 : index
    %c0_2 = arith.constant 0 : index
    %1 = vector.load %arg2[%c0_1, %c0_2] : memref<256x128xbf16, #tpu.memory_space<vmem>>, vector<256x128xbf16>
    %cst = arith.constant dense<0.000000e+00> : vector<8x128xf32>
    %2 = tpu.matmul %0, %1, %cst {dimension_numbers = #tpu.dot_dimension_numbers<[1], [0], [0], [1], [0, 0, 1, 1], [], []>} : vector<8x256xbf16>, vector<256x128xbf16>, vector<8x128xf32> -> vector<8x128xf32>
    %c0_3 = arith.constant 0 : index
    %c0_4 = arith.constant 0 : index
    %3 = vector.load %arg3[%c0_3, %c0_4] : memref<1x128xf32, #tpu.memory_space<vmem>>, vector<1x128xf32>
    %4 = vector.broadcast %3 : vector<1x128xf32> to vector<8x128xf32>
    %5 = arith.addf %2, %4 : vector<8x128xf32>
    %cst_5 = arith.constant 0.000000e+00 : f32
    %6 = vector.broadcast %cst_5 : f32 to vector<8x128xf32>
    %7 = arith.maximumf %5, %6 : vector<8x128xf32>
    %8 = arith.truncf %7 : vector<8x128xf32> to vector<8x128xbf16>
    %c0_6 = arith.constant 0 : index
    %c0_7 = arith.constant 0 : index
    %9 = vector.load %arg4[%c0_6, %c0_7] : memref<128x128xbf16, #tpu.memory_space<vmem>>, vector<128x128xbf16>
    %cst_8 = arith.constant dense<0.000000e+00> : vector<8x128xf32>
    %10 = tpu.matmul %8, %9, %cst_8 {dimension_numbers = #tpu.dot_dimension_numbers<[1], [0], [0], [1], [0, 0, 1, 1], [], []>} : vector<8x128xbf16>, vector<128x128xbf16>, vector<8x128xf32> -> vector<8x128xf32>
    %c0_9 = arith.constant 0 : index
    %c0_10 = arith.constant 0 : index
    %11 = vector.load %arg5[%c0_9, %c0_10] : memref<1x128xf32, #tpu.memory_space<vmem>>, vector<1x128xf32>
    %12 = vector.broadcast %11 : vector<1x128xf32> to vector<8x128xf32>
    %13 = arith.addf %10, %12 : vector<8x128xf32>
    %c0_11 = arith.constant 0 : index
    %c0_12 = arith.constant 0 : index
    %14 = vector.load %arg6[%c0_11, %c0_12] : memref<128x128xbf16, #tpu.memory_space<vmem>>, vector<128x128xbf16>
    %cst_13 = arith.constant dense<0.000000e+00> : vector<8x128xf32>
    %15 = tpu.matmul %8, %14, %cst_13 {dimension_numbers = #tpu.dot_dimension_numbers<[1], [0], [0], [1], [0, 0, 1, 1], [], []>} : vector<8x128xbf16>, vector<128x128xbf16>, vector<8x128xf32> -> vector<8x128xf32>
    %c0_14 = arith.constant 0 : index
    %c0_15 = arith.constant 0 : index
    %16 = vector.load %arg7[%c0_14, %c0_15] : memref<1x128xf32, #tpu.memory_space<vmem>>, vector<1x128xf32>
    %17 = vector.broadcast %16 : vector<1x128xf32> to vector<8x128xf32>
    %18 = arith.addf %15, %17 : vector<8x128xf32>
    %cst_16 = arith.constant 0.000000e+00 : f32
    %19 = vector.broadcast %cst_16 : f32 to vector<8x128xf32>
    %20 = arith.maximumf %18, %19 : vector<8x128xf32>
    %21 = arith.truncf %20 : vector<8x128xf32> to vector<8x128xbf16>
    %c0_17 = arith.constant 0 : index
    %c0_18 = arith.constant 0 : index
    %22 = vector.load %arg8[%c0_17, %c0_18] : memref<128x256xbf16, #tpu.memory_space<vmem>>, vector<128x256xbf16>
    %cst_19 = arith.constant dense<0.000000e+00> : vector<8x256xf32>
    %23 = tpu.matmul %21, %22, %cst_19 {dimension_numbers = #tpu.dot_dimension_numbers<[1], [0], [0], [1], [0, 0, 1, 1], [], []>} : vector<8x128xbf16>, vector<128x256xbf16>, vector<8x256xf32> -> vector<8x256xf32>
    %c0_20 = arith.constant 0 : index
    %c0_21 = arith.constant 0 : index
    %24 = vector.load %arg9[%c0_20, %c0_21] : memref<1x256xf32, #tpu.memory_space<vmem>>, vector<1x256xf32>
    %25 = vector.broadcast %24 : vector<1x256xf32> to vector<8x256xf32>
    %26 = arith.addf %23, %25 : vector<8x256xf32>
    %c0_22 = arith.constant 0 : index
    %c0_23 = arith.constant 0 : index
    %27 = vector.load %arg10[%c0_22, %c0_23] : memref<8x128xf32, #tpu.memory_space<vmem>>, vector<8x128xf32>
    tpu.vector_store %arg10[%c0_22, %c0_23], %13 {strides = array<i32>} : memref<8x128xf32, #tpu.memory_space<vmem>>, vector<8x128xf32>,
    %c0_24 = arith.constant 0 : index
    %c0_25 = arith.constant 0 : index
    %28 = vector.load %arg11[%c0_24, %c0_25] : memref<8x256xf32, #tpu.memory_space<vmem>>, vector<8x256xf32>
    tpu.vector_store %arg11[%c0_24, %c0_25], %26 {strides = array<i32>} : memref<8x256xf32, #tpu.memory_space<vmem>>, vector<8x256xf32>,
    return
  }
  func.func @transform_0(%arg0: i32) -> (i32, i32) {
    %c0_i32 = arith.constant 0 : i32
    %c0_i32_0 = arith.constant 0 : i32
    return %arg0, %c0_i32 : i32, i32
  }
  func.func @transform_1(%arg0: i32) -> (i32, i32) {
    %c0_i32 = arith.constant 0 : i32
    %c0_i32_0 = arith.constant 0 : i32
    %c0_i32_1 = arith.constant 0 : i32
    return %c0_i32, %c0_i32_0 : i32, i32
  }
  func.func @transform_2(%arg0: i32) -> (i32, i32) {
    %c0_i32 = arith.constant 0 : i32
    %c0_i32_0 = arith.constant 0 : i32
    %c0_i32_1 = arith.constant 0 : i32
    return %c0_i32, %c0_i32_0 : i32, i32
  }
  func.func @transform_3(%arg0: i32) -> (i32, i32) {
    %c0_i32 = arith.constant 0 : i32
    %c0_i32_0 = arith.constant 0 : i32
    %c0_i32_1 = arith.constant 0 : i32
    return %c0_i32, %c0_i32_0 : i32, i32
  }
  func.func @transform_4(%arg0: i32) -> (i32, i32) {
    %c0_i32 = arith.constant 0 : i32
    %c0_i32_0 = arith.constant 0 : i32
    %c0_i32_1 = arith.constant 0 : i32
    return %c0_i32, %c0_i32_0 : i32, i32
  }
  func.func @transform_5(%arg0: i32) -> (i32, i32) {
    %c0_i32 = arith.constant 0 : i32
    %c0_i32_0 = arith.constant 0 : i32
    %c0_i32_1 = arith.constant 0 : i32
    return %c0_i32, %c0_i32_0 : i32, i32
  }
  func.func @transform_6(%arg0: i32) -> (i32, i32) {
    %c0_i32 = arith.constant 0 : i32
    %c0_i32_0 = arith.constant 0 : i32
    %c0_i32_1 = arith.constant 0 : i32
    return %c0_i32, %c0_i32_0 : i32, i32
  }
  func.func @transform_7(%arg0: i32) -> (i32, i32) {
    %c0_i32 = arith.constant 0 : i32
    %c0_i32_0 = arith.constant 0 : i32
    %c0_i32_1 = arith.constant 0 : i32
    return %c0_i32, %c0_i32_0 : i32, i32
  }
  func.func @transform_8(%arg0: i32) -> (i32, i32) {
    %c0_i32 = arith.constant 0 : i32
    %c0_i32_0 = arith.constant 0 : i32
    %c0_i32_1 = arith.constant 0 : i32
    return %c0_i32, %c0_i32_0 : i32, i32
  }
  func.func @transform_9(%arg0: i32) -> (i32, i32) {
    %c0_i32 = arith.constant 0 : i32
    %c0_i32_0 = arith.constant 0 : i32
    return %arg0, %c0_i32 : i32, i32
  }
  func.func @transform_10(%arg0: i32) -> (i32, i32) {
    %c0_i32 = arith.constant 0 : i32
    %c0_i32_0 = arith.constant 0 : i32
    return %arg0, %c0_i32 : i32, i32
  }
}

</mosaic_0001>

<bundles_post_ra>
// kernel: tpu_custom_call.1
= control target key start
LH: loop header
LB: loop body
LE: loop exit
PB: predicated region body
PF: predicated region fallthrough
CT: control target
= control target key end

     0   :  { %16 = vsyncpa [#allocation3], 0  ;;  %s1256_s0 = inlined_call_operand.hbm [shape: bf16[8,256], index: 0, kind: input, shape index: {}]   ;;  %s1257_s1 = inlined_call_operand.hbm [shape: bf16[256,128], index: 1, kind: input, shape index: {}]   ;;  %s1258_s2 = inlined_call_operand.vmem [shape: f32[1,128], index: 2, kind: input, shape index: {}]   ;;  %s1259_s3 = inlined_call_operand.hbm [shape: bf16[128,128], index: 3, kind: input, shape index: {}]   ;;  %s1260_s4 = inlined_call_operand.vmem [shape: f32[1,128], index: 4, kind: input, shape index: {}]   ;;  %s1261_s5 = inlined_call_operand.hbm [shape: bf16[128,128], index: 5, kind: input, shape index: {}]   ;;  %s1262_s6 = inlined_call_operand.vmem [shape: f32[1,128], index: 6, kind: input, shape index: {}]   ;;  %s1263_s7 = inlined_call_operand.hbm [shape: bf16[128,256], index: 7, kind: input, shape index: {}]   ;;  %s1264_s8 = inlined_call_operand.vmem [shape: f32[1,256], index: 8, kind: input, shape index: {}]   ;;  %s1265_s9 = inlined_call_operand.hbm [shape: f32[8,128], index: 9, kind: output, shape index: {0}]   ;;  %s1266_s10 = inlined_call_operand.hbm [shape: f32[8,256], index: 10, kind: output, shape index: {1}]  }
   0x1   :  { %17 = vsyncpa [#allocation6], 0 }
   0x2   :  { %18 = vsyncpa [#allocation9], 0 }
   0x3   :  { %19 = vsyncpa [#allocation4], 0 }
   0x4   :  { %20 = vsyncpa [#allocation13], 0  ;;  %s1064_s13 = smov [#allocation5]   ;;  %s900_s17 = scalar_lea.hbm %s1257_s1, 2048 }
   0x5   :  { %s36_s14 = sshll.u32 %s1064_s13, 4  ;;  %p901_p0 = scmp.ne.s32.totalorder %s1257_s1, %s900_s17  ;;  %s37_s14 = int_to_ptr.vmem [resolvable:$true] %s36_s14 }
   0x6   :  { %p904_p1 = scmp.lt.u32.totalorder %s900_s17, %s1257_s1 }
   0x8   :  { %p906_p2 = pnand %p904_p1, %p901_p0 }
   0xa   :  { %909 = shalt.err (!%p906_p2)
}
   0xb   :  { %s910_s22 = scalar_lea.vmem %s37_s14, 2048  ;;  %p915_p4 = scmp.lt.s32.totalorder %s37_s14, %s37_s14 }
   0xc   :  { %p911_p3 = scmp.ne.s32.totalorder %s37_s14, %s910_s22  ;;  %p916_p5 = scmp.lt.s32.totalorder %s910_s22, %s910_s22 }
   0xe   :  { %p917_p6 = por %p916_p5, %p915_p4 }
  0x10   :  { %p918_p7 = pnand %p917_p6, %p911_p3 }
  0x12   :  { %921 = shalt.err (!%p918_p7)
}
  0x13   :  { %s1065_s23 = smov 64   ;;  %s1066_s24 = smov 4  }
  0x14   :  { %42 = dma.hbm_to_vmem [thread:$0]  %s1257_s1, 2048, %s37_s14, [#allocation6], %s1065_s23, %s1065_s23, %s1066_s24  }
  0x15   :  { %s1067_s27 = smov [#allocation8]   ;;  %s1068_s29 = smov [#allocation2]  }
  0x16   :  { %s64_s28 = sshll.u32 %s1067_s27, 4  ;;  %s27_s30 = sshll.u32 %s1068_s29, 4  ;;  %s65_s28 = int_to_ptr.vmem [resolvable:$true] %s64_s28  ;;  %s28_s30 = int_to_ptr.vmem [resolvable:$true] %s27_s30 }
  0x17   :  { %s922_s13 = scalar_lea.hbm %s1261_s5, 1024 }
  0x18   :  { %p923_p8 = scmp.ne.s32.totalorder %s1261_s5, %s922_s13  ;;  %p926_p9 = scmp.lt.u32.totalorder %s922_s13, %s1261_s5 }
  0x1a   :  { %p928_p10 = pnand %p926_p9, %p923_p8 }
  0x1c   :  { %931 = shalt.err (!%p928_p10)
}
  0x1d   :  { %s932_s1 = scalar_lea.vmem %s65_s28, 1024  ;;  %p937_p12 = scmp.lt.s32.totalorder %s65_s28, %s65_s28 }
  0x1e   :  { %p933_p11 = scmp.ne.s32.totalorder %s65_s28, %s932_s1  ;;  %p938_p13 = scmp.lt.s32.totalorder %s932_s1, %s932_s1 }
  0x20   :  { %p939_p0 = por %p938_p13, %p937_p12 }
  0x22   :  { %p940_p1 = pnand %p939_p0, %p933_p11 }
  0x24   :  { %943 = shalt.err (!%p940_p1)
}
  0x25   :  { %70 = dma.hbm_to_vmem [thread:$0]  %s1261_s5, 1024, %s65_s28, [#allocation9], %s1065_s23, %s1065_s23, %s1066_s24  }
  0x26   :  { %s944_s22 = scalar_lea.hbm %s1256_s0, 128 }
  0x27   :  { %p945_p2 = scmp.ne.s32.totalorder %s1256_s0, %s944_s22  ;;  %p948_p3 = scmp.lt.u32.totalorder %s944_s22, %s1256_s0 }
  0x29   :  { %p950_p4 = pnand %p948_p3, %p945_p2 }
  0x2b   :  { %953 = shalt.err (!%p950_p4)
}
  0x2c   :  { %s954_s11 = scalar_lea.vmem %s28_s30, 128  ;;  %p959_p6 = scmp.lt.s32.totalorder %s28_s30, %s28_s30 }
  0x2d   :  { %p955_p5 = scmp.ne.s32.totalorder %s28_s30, %s954_s11  ;;  %p960_p7 = scmp.lt.s32.totalorder %s954_s11, %s954_s11 }
  0x2f   :  { %p961_p8 = por %p960_p7, %p959_p6 }
  0x31   :  { %p962_p9 = pnand %p961_p8, %p955_p5 }
  0x33   :  { %965 = shalt.err (!%p962_p9)
}
  0x34   :  { %30 = dma.hbm_to_vmem [thread:$0]  %s1256_s0, 128, %s28_s30, [#allocation3]  }
  0x35   :  { %s1069_s12 = smov [#allocation7]   ;;  %s1070_s15 = smov [#allocation10]  }
  0x36   :  { %s50_s13 = sshll.u32 %s1069_s12, 4  ;;  %s78_s16 = sshll.u32 %s1070_s15, 4  ;;  %s51_s13 = int_to_ptr.vmem [resolvable:$true] %s50_s13  ;;  %s79_s16 = int_to_ptr.vmem [resolvable:$true] %s78_s16 }
  0x37   :  { %s966_s1 = scalar_lea.hbm %s1259_s3, 1024 }
  0x38   :  { %p967_p10 = scmp.ne.s32.totalorder %s1259_s3, %s966_s1  ;;  %p970_p11 = scmp.lt.u32.totalorder %s966_s1, %s1259_s3 }
  0x3a   :  { %p972_p12 = pnand %p970_p11, %p967_p10 }
  0x3c   :  { %975 = shalt.err (!%p972_p12)
}
  0x3d   :  { %s976_s0 = scalar_lea.vmem %s51_s13, 1024  ;;  %p981_p0 = scmp.lt.s32.totalorder %s51_s13, %s51_s13 }
  0x3e   :  { %p977_p13 = scmp.ne.s32.totalorder %s51_s13, %s976_s0  ;;  %p982_p1 = scmp.lt.s32.totalorder %s976_s0, %s976_s0 }
  0x40   :  { %p983_p2 = por %p982_p1, %p981_p0 }
  0x42   :  { %p984_p3 = pnand %p983_p2, %p977_p13 }
  0x44   :  { %987 = shalt.err (!%p984_p3)
}
  0x45   :  { %56 = dma.hbm_to_vmem [thread:$0]  %s1259_s3, 1024, %s51_s13, [#allocation6], %s1065_s23, %s1065_s23, %s1066_s24  }
  0x46   :  { %s988_s27 = scalar_lea.hbm %s1263_s7, 2048 }
  0x47   :  { %p989_p4 = scmp.ne.s32.totalorder %s1263_s7, %s988_s27  ;;  %p992_p5 = scmp.lt.u32.totalorder %s988_s27, %s1263_s7 }
  0x49   :  { %p994_p6 = pnand %p992_p5, %p989_p4 }
  0x4b   :  { %997 = shalt.err (!%p994_p6)
}
  0x4c   :  { %s998_s12 = scalar_lea.vmem %s79_s16, 2048  ;;  %p1003_p8 = scmp.lt.s32.totalorder %s79_s16, %s79_s16 }
  0x4d   :  { %p999_p7 = scmp.ne.s32.totalorder %s79_s16, %s998_s12  ;;  %p1004_p9 = scmp.lt.s32.totalorder %s998_s12, %s998_s12 }
  0x4f   :  { %p1005_p10 = por %p1004_p9, %p1003_p8 }
  0x51   :  { %p1006_p11 = pnand %p1005_p10, %p999_p7 }
  0x53   :  { %1009 = shalt.err (!%p1006_p11)
}
  0x54   :  { %s1071_s3 = smov 128   ;;  %s1072_s23 = smov 8  }
  0x55   :  { %84 = dma.hbm_to_vmem [thread:$0]  %s1263_s7, 2048, %s79_s16, [#allocation9], %s1071_s3, %s1071_s3, %s1072_s23  }
  0x56   :  { %1054 = dma.done.wait [#allocation3], 128  }
  0x57   :  { %1055 = vsyncadd [#allocation3], 4294967168 }
  0x58   :  { %1056 = dma.done.wait [#allocation6], 3072  }
  0x59   :  { %1057 = vsyncadd [#allocation6], 4294964224 }
  0x5a   :  { %1058 = dma.done.wait [#allocation9], 3072  }
  0x5b   :  { %1059 = vsyncadd [#allocation9], 4294964224  ;;  %v1073_v0 = vmov 0.0   ;;  %v842_v1 = vld [vmem:[#allocation5 + $0x40] sm:$0xff]   ;;  %v844_v3 = vld [vmem:[#allocation5 + $0x48] sm:$0xff]   ;;  %vm1074_vm0 = vmmov 0  }
  0x5c   :  { %788 = vmatprep.subr.bf16.mxu1 %v1073_v0  ;;  %v843_v2 = vld [vmem:[#allocation5] sm:$0xff]   ;;  %748 = vmatprep.subr.bf16.mxu0 %v842_v1  ;;  %v845_v4 = vld [vmem:[#allocation5 + $0x8] sm:$0xff]   ;;  %v846_v5 = vld [vmem:[#allocation5 + $0x50] sm:$0xff]   ;;  %v1075_v61 = vmov 0   ;;  %s1076_s1 = smov [#allocation11]  }
  0x5d   :  { %749 = vmatpush3.bf16.msra.mxu0 %v843_v2  ;;  %v847_v6 = vld [vmem:[#allocation5 + $0x10] sm:$0xff]   ;;  %v848_v7 = vld [vmem:[#allocation5 + $0x58] sm:$0xff]   ;;  %v850_v9 = vld [vmem:[#allocation5 + $0x60] sm:$0xff]   ;;  %804 = vmatprep.mubr.msk.bf16.mxu1 %vm1074_vm0, %v1073_v0 }
  0x5e   :  { %750 = vmatprep.subr.bf16.mxu0 %v844_v3  ;;  %v849_v8 = vld [vmem:[#allocation5 + $0x18] sm:$0xff]   ;;  %v851_v10 = vld [vmem:[#allocation5 + $0x20] sm:$0xff]   ;;  %v852_v11 = vld [vmem:[#allocation5 + $0x68] sm:$0xff]  }
  0x5f   :  { %v103_v12 = vld [vmem:[#allocation2] sm:$0xff]  ;;  %v860_v14 = vld [vmem:[#allocation7] sm:$0xff]   ;;  %v853_v15 = vld [vmem:[#allocation5 + $0x28] sm:$0xff]  }
  0x60   :  { %v697_v13 = vcombine.high %v103_v12, %v103_v12  ;;  %v854_v16 = vld [vmem:[#allocation5 + $0x70] sm:$0xff]   ;;  %789 = vmatpush3.bf16.msra.mxu1 %v860_v14  ;;  %v862_v17 = vld [vmem:[#allocation7 + $0x8] sm:$0xff]   ;;  %v856_v19 = vld [vmem:[#allocation5 + $0x78] sm:$0xff]   ;;  %v696_v24 = vcombine.low %v103_v12, %v103_v12 }
  0x61   :  { %751 = vmatpush3.bf16.msra.mxu0 %v845_v4  ;;  %790 = vmatprep.subr.bf16.mxu1 %v1073_v0  ;;  %v855_v18 = vld [vmem:[#allocation5 + $0x30] sm:$0xff]   ;;  %v857_v21 = vld [vmem:[#allocation5 + $0x38] sm:$0xff]   ;;  %v861_v23 = vld [vmem:[#allocation8] sm:$0xff]  }
  0x62   :  { %752 = vmatprep.subr.bf16.mxu0 %v846_v5  ;;  %278 = vmatprep.mubr.bf16.mxu0 %v697_v13  ;;  %v864_v20 = vld [vmem:[#allocation7 + $0x10] sm:$0xff]   ;;  %v866_v22 = vld [vmem:[#allocation7 + $0x18] sm:$0xff]   ;;  %v868_v25 = vld [vmem:[#allocation7 + $0x20] sm:$0xff]  }
  0x63   :  { %v863_v26 = vld [vmem:[#allocation8 + $0x8] sm:$0xff]   ;;  %v865_v28 = vld [vmem:[#allocation8 + $0x10] sm:$0xff]   ;;  %v867_v29 = vld [vmem:[#allocation8 + $0x18] sm:$0xff]  }
  0x64   :  { %791 = vmatpush3.bf16.msra.mxu1 %v862_v17  ;;  %v870_v27 = vld [vmem:[#allocation7 + $0x28] sm:$0xff]   ;;  %v869_v30 = vld [vmem:[#allocation8 + $0x20] sm:$0xff]   ;;  %v872_v32 = vld [vmem:[#allocation7 + $0x30] sm:$0xff]  }
  0x65   :  { %753 = vmatpush3.bf16.msra.mxu0 %v847_v6  ;;  %792 = vmatprep.subr.bf16.mxu1 %v1073_v0  ;;  %v871_v31 = vld [vmem:[#allocation8 + $0x28] sm:$0xff]   ;;  %v873_v33 = vld [vmem:[#allocation8 + $0x30] sm:$0xff]   ;;  %v874_v34 = vld [vmem:[#allocation7 + $0x38] sm:$0xff]  }
  0x66   :  { %754 = vmatprep.subr.bf16.mxu0 %v848_v7  ;;  %v875_v35 = vld [vmem:[#allocation8 + $0x38] sm:$0xff]   ;;  %v878_v36 = vld [vmem:[#allocation10 + $0x4] ss:$8 sps:$4 sm:$0xff]   ;;  %v876_v45 = vld [vmem:[#allocation10] ss:$8 sps:$4 sm:$0xff]  }
  0x67   :  { %v695_v38 = vld [vmem:[%s1258_s2] ss:$0 sm:$0xff]  ;;  %v881_v47 = vld [vmem:[#allocation10 + $0x14] ss:$8 sps:$4 sm:$0xff]   ;;  %v884_v49 = vld [vmem:[#allocation10 + $0x24] ss:$8 sps:$4 sm:$0xff]  }
  0x68   :  { %793 = vmatpush3.bf16.msra.mxu1 %v864_v20  ;;  %v879_v48 = vld [vmem:[#allocation10 + $0x10] ss:$8 sps:$4 sm:$0xff]   ;;  %v882_v50 = vld [vmem:[#allocation10 + $0x20] ss:$8 sps:$4 sm:$0xff]   ;;  %v887_v51 = vld [vmem:[#allocation10 + $0x34] ss:$8 sps:$4 sm:$0xff]  }
  0x69   :  { %755 = vmatpush3.bf16.msra.mxu0 %v849_v8  ;;  %794 = vmatprep.subr.bf16.mxu1 %v1073_v0  ;;  %v885_v52 = vld [vmem:[#allocation10 + $0x30] ss:$8 sps:$4 sm:$0xff]   ;;  %v890_v53 = vld [vmem:[#allocation10 + $0x44] ss:$8 sps:$4 sm:$0xff]   ;;  %v888_v54 = vld [vmem:[#allocation10 + $0x40] ss:$8 sps:$4 sm:$0xff]  }
  0x6a   :  { %756 = vmatprep.subr.bf16.mxu0 %v850_v9  ;;  %v893_v55 = vld [vmem:[#allocation10 + $0x54] ss:$8 sps:$4 sm:$0xff]   ;;  %v891_v56 = vld [vmem:[#allocation10 + $0x50] ss:$8 sps:$4 sm:$0xff]   ;;  %v896_v57 = vld [vmem:[#allocation10 + $0x64] ss:$8 sps:$4 sm:$0xff]  }
  0x6b   :  { %v894_v58 = vld [vmem:[#allocation10 + $0x60] ss:$8 sps:$4 sm:$0xff]   ;;  %v899_v59 = vld [vmem:[#allocation10 + $0x74] ss:$8 sps:$4 sm:$0xff]   ;;  %v897_v60 = vld [vmem:[#allocation10 + $0x70] ss:$8 sps:$4 sm:$0xff]  }
  0x6c   :  { %795 = vmatpush3.bf16.msra.mxu1 %v866_v22  ;;  %v714_v62 = vld [vmem:[%s1260_s4] ss:$0 sm:$0xff]  ;;  %s670_s4 = sshll.u32 %s1076_s1, 4  ;;  %s671_s4 = int_to_ptr.vmem [resolvable:$true] %s670_s4 }
  0x6d   :  { %757 = vmatpush3.bf16.msra.mxu0 %v851_v10  ;;  %796 = vmatprep.subr.bf16.mxu1 %v1073_v0  ;;  %v723_v63 = vld [vmem:[%s1262_s6] ss:$0 sm:$0xff]  ;;  %s1010_s14 = scalar_lea.vmem %s671_s4, 128  ;;  %p1015_p13 = scmp.lt.s32.totalorder %s671_s4, %s671_s4 }
  0x6e   :  { %758 = vmatprep.subr.bf16.mxu0 %v852_v11  ;;  %p1011_p12 = scmp.ne.s32.totalorder %s671_s4, %s1010_s14  ;;  %p1016_p0 = scmp.lt.s32.totalorder %s1010_s14, %s1010_s14 }
  0x70   :  { %797 = vmatpush3.bf16.msra.mxu1 %v868_v25  ;;  %p1017_p1 = por %p1016_p0, %p1015_p13 }
  0x71   :  { %759 = vmatpush3.bf16.msra.mxu0 %v853_v15  ;;  %798 = vmatprep.subr.bf16.mxu1 %v1073_v0 }
  0x72   :  { %760 = vmatprep.subr.bf16.mxu0 %v854_v16  ;;  %p1018_p2 = pnand %p1017_p1, %p1011_p12 }
  0x74   :  { %799 = vmatpush3.bf16.msra.mxu1 %v870_v27 }
  0x75   :  { %761 = vmatpush3.bf16.msra.mxu0 %v855_v18  ;;  %800 = vmatprep.subr.bf16.mxu1 %v1073_v0 }
  0x76   :  { %762 = vmatprep.subr.bf16.mxu0 %v856_v19 }
  0x78   :  { %801 = vmatpush3.bf16.msra.mxu1 %v872_v32 }
  0x79   :  { %763 = vmatpush3.bf16.msra.mxu0 %v857_v21  ;;  %802 = vmatprep.subr.bf16.mxu1 %v1073_v0 }
  0x7a   :  { %808 = vmatprep.subr.bf16.mxu0 %v1073_v0 }
  0x7c   :  { %279 = vmatmul.mubr.bf16.vlgmr.msra.gmra.mrb[0].mxu0 %v696_v24  ;;  %803 = vmatpush3.bf16.msra.mxu1 %v874_v34 }
  0x7d   :  { %809 = vmatpush3.bf16.msra.mxu0 %v861_v23  ;;  %824 = vmatprep.mubr.msk.bf16.mxu0 %vm1074_vm0, %v1073_v0 }
  0x7e   :  { %810 = vmatprep.subr.bf16.mxu0 %v1073_v0  ;;  %620 = vmatprep.subr.bf16.mxu1 %v878_v36 }
  0x81   :  { %811 = vmatpush3.bf16.msra.mxu0 %v863_v26 }
  0x82   :  { %812 = vmatprep.subr.bf16.mxu0 %v1073_v0 }
  0x85   :  { %813 = vmatpush3.bf16.msra.mxu0 %v865_v28 }
  0x86   :  { %814 = vmatprep.subr.bf16.mxu0 %v1073_v0 }
  0x89   :  { %815 = vmatpush3.bf16.msra.mxu0 %v867_v29 }
  0x8a   :  { %816 = vmatprep.subr.bf16.mxu0 %v1073_v0 }
  0x8d   :  { %817 = vmatpush3.bf16.msra.mxu0 %v869_v30 }
  0x8e   :  { %818 = vmatprep.subr.bf16.mxu0 %v1073_v0 }
  0x91   :  { %819 = vmatpush3.bf16.msra.mxu0 %v871_v31 }
  0x92   :  { %820 = vmatprep.subr.bf16.mxu0 %v1073_v0 }
  0x95   :  { %821 = vmatpush3.bf16.msra.mxu0 %v873_v33 }
  0x96   :  { %822 = vmatprep.subr.bf16.mxu0 %v1073_v0 }
  0x99   :  { %823 = vmatpush3.bf16.msra.mxu0 %v875_v35 }
 0x14f   :  { %v764_v37 = vpop.f32.mrb[0].mxu0 }
 0x150   :  { %v765_v39 = vpop.f32.mrb[1].mxu0 }
 0x151   :  { %v766_v40 = vadd.f32 %v765_v39, %v764_v37  ;;  %v767_v41 = vpop.f32.mrb[2].mxu0 }
 0x152   :  { %v768_v42 = vpop.f32.mrb[3].mxu0 }
 0x153   :  { %v281_v43 = vadd.f32 %v766_v40, %v695_v38 }
 0x155   :  { %v286_v44 = vmax.f32 %v281_v43, 0.0 }
 0x157   :  { %v287_v46 = vpack.c.bf16 %v286_v44, %v286_v44 }
 0x159   :  { %805 = vmatmul.mubr.bf16.vlgmr.msra.gmra.mrb[0].mxu1 %v287_v46  ;;  %825 = vmatmul.mubr.bf16.vlgmr.msra.gmra.mrb[4].mxu0 %v287_v46 }
 0x15a   :  { %621 = vmatpush1.bf16.msra.mxu1 %v876_v45  ;;  %652 = vmatprep.mubr.bf16.mxu1 %v1075_v61 }
 0x15b   :  { %622 = vmatprep.subr.bf16.mxu1 %v881_v47 }
 0x15e   :  { %623 = vmatpush1.bf16.msra.mxu1 %v879_v48 }
 0x15f   :  { %624 = vmatprep.subr.bf16.mxu1 %v884_v49 }
 0x162   :  { %625 = vmatpush1.bf16.msra.mxu1 %v882_v50 }
 0x163   :  { %626 = vmatprep.subr.bf16.mxu1 %v887_v51 }
 0x166   :  { %627 = vmatpush1.bf16.msra.mxu1 %v885_v52 }
 0x167   :  { %628 = vmatprep.subr.bf16.mxu1 %v890_v53 }
 0x16a   :  { %629 = vmatpush1.bf16.msra.mxu1 %v888_v54 }
 0x16b   :  { %630 = vmatprep.subr.bf16.mxu1 %v893_v55 }
 0x16e   :  { %631 = vmatpush1.bf16.msra.mxu1 %v891_v56 }
 0x16f   :  { %632 = vmatprep.subr.bf16.mxu1 %v896_v57 }
 0x172   :  { %633 = vmatpush1.bf16.msra.mxu1 %v894_v58 }
 0x173   :  { %634 = vmatprep.subr.bf16.mxu1 %v899_v59 }
 0x176   :  { %635 = vmatpush1.bf16.msra.mxu1 %v897_v60 }
 0x22c   :  { %v393_v0 = vpop.f32.mrb[0].mxu1  ;;  %v504_v1 = vpop.f32.mrb[4].mxu0 }
 0x22d   :  { %v394_v2 = vadd.f32 %v714_v62, %v393_v0  ;;  %v505_v3 = vadd.f32 %v723_v63, %v504_v1  ;;  %v806_v4 = vpop.f32.mrb[1].mxu1  ;;  %v826_v5 = vpop.f32.mrb[5].mxu0 }
 0x22e   :  { %v396_v6 = vpop.f32.mrb[2].mxu1  ;;  %v507_v7 = vpop.f32.mrb[6].mxu0 }
 0x22f   :  { %661 = vst [vmem:[#allocation11] sm:$0xff] %v394_v2  ;;  %v510_v8 = vmax.f32 %v505_v3, 0.0  ;;  %v807_v9 = vpop.f32.mrb[3].mxu1  ;;  %v827_v10 = vpop.f32.mrb[7].mxu0 }
 0x231   :  { %v511_v11 = vpack.c.bf16 %v510_v8, %v510_v8 }
 0x233   :  { %653 = vmatmul.mubr.bf16.vlgmr.msra.gmra.mrb[4].mxu1 %v511_v11 }
 0x234   :  { %1021 = shalt.err (!%p1018_p2)
}
 0x235   :  { %s1022_s20 = scalar_lea.hbm %s1265_s9, 128 }
 0x236   :  { %p1023_p3 = scmp.ne.s32.totalorder %s1265_s9, %s1022_s20  ;;  %p1026_p4 = scmp.lt.u32.totalorder %s1022_s20, %s1265_s9 }
 0x238   :  { %p1028_p5 = pnand %p1026_p4, %p1023_p3 }
 0x23a   :  { %1031 = shalt.err (!%p1028_p5)
}
 0x23b   :  { %673 = dma.vmem_to_hbm [thread:$0]  %s671_s4, 128, %s1265_s9, [#allocation4]   ;;  %v530_v12 = vlaneseq  ;;  %v528_v15 = vld [vmem:[%s1264_s8] sm:$0x3] }
 0x23c   :  { %s1077_s11 = smov [#allocation12]  }
 0x23d   :  { %v531_v13 = vshrl.u32 %v530_v12, 7  ;;  %s680_s5 = sshll.u32 %s1077_s11, 4  ;;  %s681_s5 = int_to_ptr.vmem [resolvable:$true] %s680_s5 }
 0x23e   :  { %s1032_s9 = scalar_lea.vmem %s681_s5, 256  ;;  %p1037_p7 = scmp.lt.s32.totalorder %s681_s5, %s681_s5 }
 0x23f   :  { %v532_v14 = vsub.s32 0, %v531_v13  ;;  %v536_v16 = vsub.s32 1, %v531_v13  ;;  %p1033_p6 = scmp.ne.s32.totalorder %s681_s5, %s1032_s9  ;;  %p1038_p8 = scmp.lt.s32.totalorder %s1032_s9, %s1032_s9 }
 0x241   :  { %v533_v17 = vrot.slane %v528_v15, %v532_v14  ;;  %v537_v18 = vrot.slane %v528_v15, %v536_v16  ;;  %p1039_p9 = por %p1038_p8, %p1037_p7 }
 0x243   :  { %p1040_p10 = pnand %p1039_p9, %p1033_p6 }
 0x306   :  { %v654_v19 = vpop.f32.mrb[4].mxu1 }
 0x307   :  { %v655_v20 = vadd.f32 %v654_v19, %v533_v17  ;;  %v656_v21 = vpop.f32.mrb[5].mxu1 }
 0x308   :  { %v657_v22 = vadd.f32 %v656_v21, %v537_v18  ;;  %v658_v23 = vpop.f32.mrb[6].mxu1 }
 0x309   :  { %662 = vst [vmem:[#allocation12] sm:$0xff] %v655_v20  ;;  %v659_v24 = vpop.f32.mrb[7].mxu1 }
 0x30a   :  { %663 = vst [vmem:[#allocation12 + $0x8] sm:$0xff] %v657_v22 }
 0x30b   :  { %1043 = shalt.err (!%p1040_p10)
}
 0x30c   :  { %s1044_s12 = scalar_lea.hbm %s1266_s10, 256 }
 0x30d   :  { %p1045_p11 = scmp.ne.s32.totalorder %s1266_s10, %s1044_s12  ;;  %p1048_p12 = scmp.lt.u32.totalorder %s1044_s12, %s1266_s10 }
 0x30f   :  { %p1050_p13 = pnand %p1048_p12, %p1045_p11 }
 0x311   :  { %1053 = shalt.err (!%p1050_p13)
}
 0x312   :  { %683 = dma.vmem_to_hbm [thread:$0]  %s681_s5, 256, %s1266_s10, [#allocation13]  }
 0x313   :  { %1060 = dma.done.wait [#allocation4], 128  }
 0x314   :  { %1061 = vsyncadd [#allocation4], 4294967168 }
 0x315   :  { %1062 = dma.done.wait [#allocation13], 256  }
 0x316   :  { %1063 = vsyncadd [#allocation13], 4294967040 }
 0x317   :  { %690 = vsyncpa [#allocation3], 1 }
 0x318   :  { %691 = vsyncpa [#allocation6], 1 }
 0x319   :  { %692 = vsyncpa [#allocation9], 1 }
 0x31a   :  { %693 = vsyncpa [#allocation4], 1 }
 0x31b   :  { %694 = vsyncpa [#allocation13], 1 }

</bundles_post_ra>
